<compile_context>
chip_gen: v7x
topology: tpu7x:2x2x1
jax: 0.10.0
libtpu: 0.0.40
codegen_flags: <defaults>
</compile_context>

<pallas_src>
import jax
import jax.numpy as jnp
from jax.experimental import pallas as pl
from jax.experimental.pallas import tpu as pltpu


def _round_up(x, m):
    return ((x + m - 1) // m) * m


def _linear_vt_kernel(head_ids_ref, x_ref, w_ref, b_ref, o_ref):
    # head_ids_ref: SMEM prefetch table (used only by the index_maps).
    # x_ref: [tm, C_in] bf16   w_ref: [C_in, tn] bf16 (head dim squeezed)
    # b_ref: [1, tn]  f32      o_ref: [tm, tn]  f32
    acc = jnp.dot(x_ref[...], w_ref[...], preferred_element_type=jnp.float32)
    o_ref[...] = (acc + b_ref[...]).astype(o_ref.dtype)


def fused_linear_vt(x_v, x_t, w_stacked, b_stacked):
    """Both heads in one tiled pallas_call.

    x_v: [N_v, C_in] f32, x_t: [N_t, C_in] f32
    w_stacked: [2, C_in, P] bf16 (pre-transposed, C_out lane-padded to P)
    b_stacked: [2, 1, P] f32
    Returns (out_padded [Nv_pad+Nt_pad, P] f32, nv_pad).
    """
    n_v, c_in = x_v.shape
    n_t, c_in_t = x_t.shape
    assert c_in == c_in_t == w_stacked.shape[1]
    p = w_stacked.shape[-1]

    # Tile sizes: lane tile 256/512 where possible (v6e/v7x MXU width), else
    # 128 (v5e / small P).  Row tile is a multiple of 16 (bf16 sublane packing),
    # capped at 256, and shrunk for small problems.
    tn = 512 if p % 512 == 0 else (256 if p % 256 == 0 else 128)
    tm = min(256, _round_up(max(n_v, n_t, 1), 16))

    nv_pad = _round_up(max(n_v, 1), tm)
    nt_pad = _round_up(max(n_t, 1), tm)
    nv_tiles = nv_pad // tm
    nt_tiles = nt_pad // tm
    n_row_tiles = nv_tiles + nt_tiles
    n_lane_tiles = p // tn

    # Pack both heads back-to-back, each padded only to its own tile multiple,
    # casting to bf16 during the copy (halves activation HBM traffic).
    # TODO(synk): produce this packed bf16 layout upstream where x_v/x_t are
    # created so this per-call copy disappears entirely.
    x_all = jnp.zeros((nv_pad + nt_pad, c_in), jnp.bfloat16)
    x_all = x_all.at[:n_v].set(x_v.astype(jnp.bfloat16))
    x_all = x_all.at[nv_pad:nv_pad + n_t].set(x_t.astype(jnp.bfloat16))

    # Per-row-tile head id (scalar-prefetched into SMEM, drives index_maps).
    head_ids = jnp.concatenate([
        jnp.zeros((nv_tiles,), jnp.int32),
        jnp.ones((nt_tiles,), jnp.int32),
    ])

    # Explicit VMEM budget (double-buffered tiles + slack); v7x-safe.
    tile_bytes = tm * c_in * 2 + c_in * tn * 2 + tn * 4 + tm * tn * 4
    vmem_limit = int(min(64 * 2**20, max(16 * 2**20, 6 * tile_bytes)))

    grid_spec = pltpu.PrefetchScalarGridSpec(
        num_scalar_prefetch=1,
        # Row axis innermost: the weight/bias tile of a head stays resident
        # across all of that head's row tiles (index unchanged -> no re-DMA).
        grid=(n_lane_tiles, n_row_tiles),
        in_specs=[
            # activations: one row tile, full K
            pl.BlockSpec((tm, c_in), lambda j, i, hid: (i, 0)),
            # weights: head picked by prefetch table, full K, one lane tile
            pl.BlockSpec((pl.Squeezed(), c_in, tn),
                         lambda j, i, hid: (hid[i], 0, j)),
            # bias: same head / lane tile
            pl.BlockSpec((pl.Squeezed(), 1, tn),
                         lambda j, i, hid: (hid[i], 0, j)),
        ],
        out_specs=pl.BlockSpec((tm, tn), lambda j, i, hid: (i, j)),
    )

    out = pl.pallas_call(
        _linear_vt_kernel,
        out_shape=jax.ShapeDtypeStruct((nv_pad + nt_pad, p), jnp.float32),
        grid_spec=grid_spec,
        compiler_params=pltpu.CompilerParams(
            dimension_semantics=("parallel", "arbitrary"),
            vmem_limit_bytes=vmem_limit),
    )(head_ids, x_all, w_stacked, b_stacked)

    return out, nv_pad


class LinearVT:
    """JAX/Pallas port of Linear_v_t (two linear heads, one fused tiled kernel)."""

    def __init__(self, in_channels, out_channels_v, out_channels_t, key):
        kv_w, kv_b, kt_w, kt_b = jax.random.split(key, 4)
        # PyTorch nn.Linear-style init: U(-1/sqrt(fan_in), 1/sqrt(fan_in)).
        bound = 1.0 / jnp.sqrt(jnp.float32(in_channels))
        self.v_weight = jax.random.uniform(
            kv_w, (out_channels_v, in_channels), jnp.float32, -bound, bound)
        self.v_bias = jax.random.uniform(
            kv_b, (out_channels_v,), jnp.float32, -bound, bound)
        self.t_weight = jax.random.uniform(
            kt_w, (out_channels_t, in_channels), jnp.float32, -bound, bound)
        self.t_bias = jax.random.uniform(
            kt_b, (out_channels_t,), jnp.float32, -bound, bound)

        self.in_channels = in_channels
        self.out_channels_v = out_channels_v
        self.out_channels_t = out_channels_t

        # Pre-transpose weights ONCE to [C_in, C_out], lane-pad C_out to a
        # multiple of 128, store as bf16 (f32 accumulate in-kernel), and stack
        # the two heads so the fused kernel indexes them with the prefetched
        # head-id table.  Bias stays f32.
        p = max(_round_up(max(out_channels_v, out_channels_t), 128), 128)
        self._p = p
        wv_t = jnp.zeros((in_channels, p), jnp.bfloat16)\
            .at[:, :out_channels_v].set(self.v_weight.T.astype(jnp.bfloat16))
        wt_t = jnp.zeros((in_channels, p), jnp.bfloat16)\
            .at[:, :out_channels_t].set(self.t_weight.T.astype(jnp.bfloat16))
        self.w_stacked = jnp.stack([wv_t, wt_t])               # [2, C_in, P] bf16
        bv = jnp.zeros((1, p), jnp.float32).at[0, :out_channels_v].set(self.v_bias)
        bt = jnp.zeros((1, p), jnp.float32).at[0, :out_channels_t].set(self.t_bias)
        self.b_stacked = jnp.stack([bv, bt])                   # [2, 1, P] f32

    def __call__(self, x_v, x_t):
        n_v = x_v.shape[0]
        n_t = x_t.shape[0]
        out, nv_pad = fused_linear_vt(x_v, x_t, self.w_stacked, self.b_stacked)
        out_v = out[:n_v, :self.out_channels_v]
        out_t = out[nv_pad:nv_pad + n_t, :self.out_channels_t]
        return out_v, out_t


if __name__ == "__main__":
    key = jax.random.PRNGKey(0)
    k_params, k_xv, k_xt = jax.random.split(key, 3)

    in_channels = 32
    out_channels_v = 16
    out_channels_t = 24
    n_v = 24   # number of "v" nodes/samples
    n_t = 16   # number of "t" nodes/samples (imbalanced on purpose)

    module = LinearVT(in_channels, out_channels_v, out_channels_t, k_params)

    x_v = jax.random.normal(k_xv, (n_v, in_channels), jnp.float32)
    x_t = jax.random.normal(k_xt, (n_t, in_channels), jnp.float32)

    out_v, out_t = module(x_v, x_t)
    jax.block_until_ready((out_v, out_t))

    assert out_v.shape == (n_v, out_channels_v)
    assert out_t.shape == (n_t, out_channels_t)

    # Reference matching the kernel's bf16-input / f32-accumulate arithmetic.
    xv_b = x_v.astype(jnp.bfloat16).astype(jnp.float32)
    xt_b = x_t.astype(jnp.bfloat16).astype(jnp.float32)
    wv_b = module.v_weight.astype(jnp.bfloat16).astype(jnp.float32)
    wt_b = module.t_weight.astype(jnp.bfloat16).astype(jnp.float32)
    ref_v = xv_b @ wv_b.T + module.v_bias
    ref_t = xt_b @ wt_b.T + module.t_bias
    assert jnp.allclose(out_v, ref_v, atol=1e-4, rtol=1e-4)
    assert jnp.allclose(out_t, ref_t, atol=1e-4, rtol=1e-4)

    # Sanity vs. the pure-f32 torch semantics (loose: bf16 weight/activation cast).
    ref_v_f32 = x_v @ module.v_weight.T + module.v_bias
    ref_t_f32 = x_t @ module.t_weight.T + module.t_bias
    assert jnp.allclose(out_v, ref_v_f32, atol=1e-1)
    assert jnp.allclose(out_t, ref_t_f32, atol=1e-1)

    print("KERNEL_OK")
</pallas_src>

<mosaic_0001>
module attributes {stable_mosaic.version = 11 : i64} {
  func.func @_linear_vt_kernel(%arg0: i32, %arg1: i32, %arg2: memref<2xi32, #tpu.memory_space<smem>>, %arg3: memref<32x32xbf16, #tpu.memory_space<vmem>>, %arg4: memref<1x32x128xbf16, #tpu.memory_space<vmem>>, %arg5: memref<1x1x128xf32, #tpu.memory_space<vmem>>, %arg6: memref<32x128xf32, #tpu.memory_space<vmem>>) attributes {dimension_semantics = [#tpu.dimension_semantics<parallel>, #tpu.dimension_semantics<arbitrary>], iteration_bounds = array<i64: 1, 2>, scalar_prefetch = 1 : i64, scratch_operands = 0 : i64, tpu.core_type = #tpu.core_type<tc>, window_params = [{transform_indices = @transform_0, window_bounds = array<i64: 32, 32>}, {transform_indices = @transform_1, window_bounds = array<i64: 1, 32, 128>}, {transform_indices = @transform_2, window_bounds = array<i64: 1, 1, 128>}, {transform_indices = @transform_3, window_bounds = array<i64: 32, 128>}]} {
    %c0 = arith.constant 0 : index
    %c0_0 = arith.constant 0 : index
    %0 = vector.load %arg3[%c0, %c0_0] : memref<32x32xbf16, #tpu.memory_space<vmem>>, vector<32x32xbf16>
    %c0_1 = arith.constant 0 : index
    %c0_2 = arith.constant 0 : index
    %c0_3 = arith.constant 0 : index
    %1 = vector.load %arg4[%c0_1, %c0_2, %c0_3] : memref<1x32x128xbf16, #tpu.memory_space<vmem>>, vector<1x32x128xbf16>
    %2 = vector.shape_cast %1 : vector<1x32x128xbf16> to vector<32x128xbf16>
    %cst = arith.constant dense<0.000000e+00> : vector<32x128xf32>
    %3 = tpu.matmul %0, %2, %cst {dimension_numbers = #tpu.dot_dimension_numbers<[1], [0], [0], [1], [0, 0, 1, 1], [], []>} : vector<32x32xbf16>, vector<32x128xbf16>, vector<32x128xf32> -> vector<32x128xf32>
    %c0_4 = arith.constant 0 : index
    %c0_5 = arith.constant 0 : index
    %c0_6 = arith.constant 0 : index
    %4 = vector.load %arg5[%c0_4, %c0_5, %c0_6] : memref<1x1x128xf32, #tpu.memory_space<vmem>>, vector<1x1x128xf32>
    %5 = vector.shape_cast %4 : vector<1x1x128xf32> to vector<1x128xf32>
    %6 = vector.broadcast %5 : vector<1x128xf32> to vector<32x128xf32>
    %7 = arith.addf %3, %6 : vector<32x128xf32>
    %c0_7 = arith.constant 0 : index
    %c0_8 = arith.constant 0 : index
    %8 = vector.load %arg6[%c0_7, %c0_8] : memref<32x128xf32, #tpu.memory_space<vmem>>, vector<32x128xf32>
    tpu.vector_store %arg6[%c0_7, %c0_8], %7 {strides = array<i32>} : memref<32x128xf32, #tpu.memory_space<vmem>>, vector<32x128xf32>,
    return
  }
  func.func @transform_0(%arg0: i32, %arg1: i32, %arg2: memref<2xi32, #tpu.memory_space<smem>>) -> (i32, i32) {
    %c0_i32 = arith.constant 0 : i32
    %c0_i32_0 = arith.constant 0 : i32
    return %arg1, %c0_i32 : i32, i32
  }
  func.func @transform_1(%arg0: i32, %arg1: i32, %arg2: memref<2xi32, #tpu.memory_space<smem>>) -> (i32, i32, i32) {
    %0 = arith.index_cast %arg1 : i32 to index
    %1 = memref.load %arg2[%0] : memref<2xi32, #tpu.memory_space<smem>>
    %c0_i32 = arith.constant 0 : i32
    %c0_i32_0 = arith.constant 0 : i32
    return %1, %c0_i32, %arg0 : i32, i32, i32
  }
  func.func @transform_2(%arg0: i32, %arg1: i32, %arg2: memref<2xi32, #tpu.memory_space<smem>>) -> (i32, i32, i32) {
    %0 = arith.index_cast %arg1 : i32 to index
    %1 = memref.load %arg2[%0] : memref<2xi32, #tpu.memory_space<smem>>
    %c0_i32 = arith.constant 0 : i32
    %c0_i32_0 = arith.constant 0 : i32
    return %1, %c0_i32, %arg0 : i32, i32, i32
  }
  func.func @transform_3(%arg0: i32, %arg1: i32, %arg2: memref<2xi32, #tpu.memory_space<smem>>) -> (i32, i32) {
    %c0_i32 = arith.constant 0 : i32
    return %arg1, %arg0 : i32, i32
  }
}

</mosaic_0001>

<bundles_post_ra>
// kernel: tpu_custom_call.1
= control target key start
LH: loop header
LB: loop body
LE: loop exit
PB: predicated region body
PF: predicated region fallthrough
CT: control target
= control target key end

     0   :  { %s824_s0 = inlined_call_operand.vmem [shape: s32[2], index: 0, kind: input, shape index: {}]   ;;  %s825_s1 = inlined_call_operand.vmem [shape: bf16[64,32], index: 1, kind: input, shape index: {}]   ;;  %s826_s2 = inlined_call_operand.vmem [shape: bf16[2,32,128], index: 2, kind: input, shape index: {}]   ;;  %s827_s3 = inlined_call_operand.vmem [shape: f32[2,1,128], index: 3, kind: input, shape index: {}]   ;;  %s828_s4 = inlined_call_operand.hbm [shape: f32[64,128], index: 4, kind: output, shape index: {}]  }
   0x1   :  { %s9_s17 = sshll.u32 %s824_s0, 4  ;;  %s10_s17 = int_to_ptr.vmem [resolvable:$true] %s9_s17 }
   0x2   :  { %s576_s18 = scalar_lea.vmem %s10_s17, 16  ;;  %p581_p1 = scmp.lt.s32.totalorder %s10_s17, %s10_s17 }
   0x3   :  { %p577_p0 = scmp.ne.s32.totalorder %s10_s17, %s576_s18  ;;  %p582_p2 = scmp.lt.s32.totalorder %s576_s18, %s576_s18 }
   0x5   :  { %p583_p3 = por %p582_p2, %p581_p1 }
   0x7   :  { %p584_p4 = pnand %p583_p3, %p577_p0 }
   0x9   :  { %587 = shalt.err (!%p584_p4)  }
   0xa   :  { %s670_s19 = smov [#allocation3]  }
   0xb   :  { %12 = dma.vmem_to_smem %s10_s17, 16, %s670_s19, [#allocation2] }
   0xc   :  { %640 = dma.done.wait [#allocation2], 16 }
   0xd   :  { %641 = vsyncadd [#allocation2], 4294967280 }
   0xe   :  { %14 = sfence }
   0xf   :  { %15 = vsyncpa [#allocation5], 0 }
  0x10   :  { %17 = vsyncpa [#allocation5 + $0x1], 0  ;;  %s702_s20 = smov 0   ;;  %s704_s21 = smov 0  }
  0x11   :  { %s706_s0 = smov 0   ;;  %s708_s22 = smov 0  }
  0x12   :  { %s710_s23 = smov 0   ;;  %s712_s24 = smov 0  }
  0x13 LB: > { %s478_s25 = sadd.s32 4294967295, %s668_s24   ;;  %s479_s26 = sadd.s32 4294967294, %s668_s24   ;;  %s668_s24 = sphi %s712_s24, %s23_s24   ;;  %s664_s23 = sphi %s710_s23, %s835_s23   ;;  %s660_s22 = sphi %s708_s22, %s834_s22   ;;  %s656_s0 = sphi %s706_s0, %s833_s0   ;;  %s652_s21 = sphi %s704_s21, %s832_s21   ;;  %s648_s20 = sphi %s702_s20, %s831_s20  }
  0x14   : > { %s32_s27 = sadd.s32 1, %s664_s23  ;;  %s130_s28 = sadd.s32 1, %s656_s0 }
  0x15   : > { %p33_p5 = scmp.ge.s32.totalorder %s32_s27, 2  ;;  %p140_p6 = scmp.ne.s32.totalorder %s656_s0, %s652_s21 }
  0x16   : > { %p141_p7 = scmp.eq.s32.totalorder %s478_s25, 1  ;;  %p146_p8 = scmp.ne.s32.totalorder %s652_s21, %s648_s20 }
  0x17   : > { %s837_s27 = smov (%p33_p5, %s32_s27), 0  ;;  %p147_p10 = scmp.eq.s32.totalorder %s479_s26, 1 }
  0x18   : > { %p742_p9 = por %p141_p7, %p140_p6  ;;  %s125_s30 = ssub.s32 %s664_s23, %s837_s27 }
  0x19   : > { %p482_p11 = scmp.ge.s32.totalorder %s668_s24, 1  ;;  %p128_p12 = scmp.eq.s32.totalorder %s125_s30, 0 }
  0x1a   : > { %p749_p13 = por %p147_p10, %p146_p8  ;;  %p198_p0 = scmp.lt.s32.totalorder %s668_s24, 3 }
  0x1b   : > { %s755_s6 = scalar_select %p128_p12, %s656_s0, %s130_s28  }
  0x1c   : > { %p199_p1 = pnand %p482_p11, %p198_p0 }
  0x1d   : > { %s244_s7 = sld [smem:[#allocation3 + %s660_s22]] (!%p199_p1)  ;;  %s484_s8 = sshll.u32 (!%p199_p1), %s660_s22, 2  ;;  %vm301_vm0 = vcmask (!%p199_p1), 261120  }
  0x1e   : > { %202 = sbr.rel (%p199_p1) target bundleno = 282 (0x11a), region = 32  ;;  %p239_p2 = scmp.lt.s32.totalorder (!%p199_p1), %s484_s8, 7 }
  0x1f   : > { %s254_s17 = sld [smem:[#allocation3 + %s660_s22]] (!%p199_p1)  ;;  %s235_s18 = sand.u32 (!%p199_p1), 1, %s652_s21  }
  0x20   : > { %s483_s28 = sshll.u32 (!%p199_p1), %s235_s18, 5 }
  0x21   : > { %s237_s30 = scalar_lea.vmem (!%p199_p1), [#allocation4], %s483_s28 }
  0x23   : > { %p245_p3 = scmp.lt.s32.totalorder (!%p199_p1), %s244_s7, 1 }
  0x25   : > { %s839_s8 = smov (!%p239_p2, %s484_s8), 7  ;;  %s841_s7 = smov (!%p245_p3, %s244_s7), 1 }
  0x26   : > { %s485_s9 = sshll.u32 %s839_s8, 2  ;;  %s500_s13 = sshll.u32 %s841_s7, 4 }
  0x27   : > { %s242_s12 = scalar_lea.vmem %s825_s1, %s485_s9  ;;  %s252_s16 = scalar_lea.vmem %s826_s2, %s500_s13 }
  0x28   : > { %v574_v0 = vld [vmem:[%s242_s12] sm:$0xff]   ;;  %v573_v2 = vld [vmem:[%s252_s16 + $0x8] sm:$0xff]   ;;  %p255_p4 = scmp.lt.s32.totalorder %s254_s17, 1  ;;  %s376_s7 = sshll.u32 %s237_s30, 4  ;;  %s771_s7 = int_to_ptr.vmem [resolvable:$true] %s376_s7 }
  0x29   : > { %510 = vmatprep.mubr.msk.bf16.mxu0 %vm301_vm0, %v574_v0  ;;  %v572_v1 = vld [vmem:[%s252_s16] sm:$0xff]   ;;  %v575_v3 = vld [vmem:[%s242_s12 + $0x8] sm:$0xff]   ;;  %s501_s8 = sshll.u32 %s660_s22, 9  ;;  %s778_s22 = scalar_lea.sflag [#allocation5], %s235_s18 }
  0x2a   : > { %506 = vmatprep.subr.bf16.mxu0 %v572_v1  ;;  %s843_s17 = smov (!%p255_p4, %s254_s17), 1  ;;  %s776_s11 = scalar_lea.hbm %s828_s4, %s501_s8 }
  0x2b   : > { %507 = vmatpush3.bf16.msra.mxu0 %v572_v1  ;;  %s260_s26 = scalar_lea.vmem %s827_s3, %s843_s17  ;;  %s588_s12 = scalar_lea.vmem %s771_s7, 512 }
  0x2c   : > { %508 = vmatprep.subr.bf16.mxu0 %v573_v2  ;;  %v488_v4 = vld [vmem:[%s260_s26] ss:$0 sm:$0xff]  ;;  %p589_p5 = scmp.ne.s32.totalorder %s771_s7, %s588_s12  ;;  %s671_s13 = smov [#allocation4]  }
  0x2d   : > { %s592_s14 = sshll.u32 %s671_s13, 4  ;;  %s593_s14 = int_to_ptr.vmem [resolvable:$false] %s592_s14 }
  0x2e   : > { %p590_p6 = pnand %p589_p5, %p742_p9  ;;  %s594_s15 = scalar_lea.vmem %s593_s14, 1024 }
  0x2f   : > { %509 = vmatpush3.bf16.msra.mxu0 %v573_v2  ;;  %p595_p8 = scmp.lt.s32.totalorder %s771_s7, %s593_s14  ;;  %p596_p10 = scmp.lt.s32.totalorder %s594_s15, %s588_s12 }
  0x30   : > { %p591_p7 = pneg %p590_p6 }
  0x31   : > { %p597_p11 = por %p596_p10, %p595_p8 }
  0x32   : > { %511 = vmatmul.mubr.msk.bf16.vlgmr.msra.gmra.mrb[0].mxu0 %vm301_vm0, %v575_v3 }
  0x33   : > { %p598_p12 = pnand %p597_p11, %p591_p7 }
 0x105   : > { %v512_v5 = vpop.f32.mrb[0].mxu0 }
 0x106   : > { %v351_v6 = vadd.f32 %v512_v5, %v488_v4  ;;  %v342_v7 = vpop.f32.mrb[1].mxu0 }
 0x107   : > { %v343_v8 = vadd.f32 %v488_v4, %v342_v7  ;;  %v513_v9 = vpop.f32.mrb[2].mxu0 }
 0x108   : > { %359 = vst [vmem:[%s237_s30 + $0x10] sm:$0xff] %v351_v6  ;;  %v354_v10 = vadd.f32 %v513_v9, %v488_v4  ;;  %v345_v11 = vpop.f32.mrb[3].mxu0 }
 0x109   : > { %357 = vst [vmem:[%s237_s30] sm:$0xff] %v343_v8  ;;  %v346_v12 = vadd.f32 %v488_v4, %v345_v11 }
 0x10a   : > { %360 = vst [vmem:[%s237_s30 + $0x18] sm:$0xff] %v354_v10 }
 0x10b   : > { %358 = vst [vmem:[%s237_s30 + $0x8] sm:$0xff] %v346_v12 }
 0x10c   : > { %601 = shalt.err (!%p598_p12)
}
 0x10d   : > { %s602_s16 = scalar_lea.hbm %s776_s11, 512  ;;  %s606_s19 = scalar_lea.hbm %s828_s4, 1024 }
 0x10e   : > { %p603_p0 = scmp.ne.s32.totalorder %s776_s11, %s602_s16  ;;  %p607_p3 = scmp.lt.u32.totalorder %s776_s11, %s828_s4 }
 0x10f   : > { %p608_p4 = scmp.lt.u32.totalorder %s606_s19, %s602_s16  ;;  %p610_p6 = scmp.lt.u32.totalorder %s602_s16, %s776_s11 }
 0x110   : > { %p604_p1 = pnand %p603_p0, %p742_p9 }
 0x111   : > { %p609_p5 = por %p608_p4, %p607_p3 }
 0x112   : > { %p605_p2 = pneg %p604_p1 }
 0x113   : > { %p611_p7 = por %p610_p6, %p609_p5 }
 0x115   : > { %p612_p8 = pnand %p611_p7, %p605_p2 }
 0x117   : > { %615 = shalt.err (!%p612_p8)
}
 0x118   : > { %s672_s28 = smov 128   ;;  %s673_s30 = smov 8  }
 0x119   : > { %514 = dma.vmem_to_hbm [thread:$0]  (%p742_p9), %s771_s7, 512, %s776_s11, %s778_s22, %s672_s28, %s672_s28, %s673_s30  }
 0x11a PF: > { %p520_p10 = scmp.ge.s32.totalorder %s668_s24, 2  ;;  %s391_s8 = sand.u32 1, %s648_s20  }
 0x11b   : > { %s392_s9 = scalar_lea.sflag [#allocation5], %s391_s8 }
 0x11c   : > { %p517_p11 = pnand %p520_p10, %p749_p13 }
 0x11e   : > { %643 = dma.done.wait (!%p517_p11), %s392_s9, 512  }
 0x11f   : > { %645 = vsyncadd (!%p517_p11), %s392_s9, 4294966784  ;;  %s23_s24 = sadd.s32 1, %s668_s24   ;;  %s831_s20 = smov %s652_s21 }
 0x120   : > { %p20_p12 = scmp.ge.s32.totalorder %s23_s24, 4   ;;  %s832_s21 = smov %s656_s0 }
 0x121   : > { %s833_s0 = smov %s755_s6  ;;  %s834_s22 = smov %s664_s23 }
 0x122   : > { %s835_s23 = smov %s837_s27  ;;  %22 = sbr.rel (!%p20_p12) target bundleno = 19 (0x13), region = 73 }
 0x129   :  { %397 = vsyncpa [#allocation5], 1 }
 0x12a   :  { %399 = vsyncpa [#allocation5 + $0x1], 1 }

</bundles_post_ra>
